<compile_context>
chip_gen: v7x
topology: tpu7x:2x2x1
jax: 0.10.0
libtpu: 0.0.40
codegen_flags: <defaults>
</compile_context>

<pallas_src>
import functools

import jax
import jax.numpy as jnp
from jax.experimental import pallas as pl
from jax.experimental.pallas import tpu as pltpu  # noqa: F401  (imported per convention)

LANES = 128
SUBLANES = 8
PARAM_ROWS = SUBLANES          # one aligned sublane tile holds gamma / beta / b2
BN_EPS = 1e-5
LEAKY_SLOPE = 0.01


def _round_up(n, m):
    return ((n + m - 1) // m) * m


def pack_mlp_params(w1, b1, gamma, beta, w2, b2):
    """Pack all static operands into one aligned f32 slab.  Call ONCE per parameter set.

    Weight layout: w1 is [D_in, H], w2 is [H, D_out] (transposed vs. PyTorch's [out, in]).
    b1 is accepted for API parity but not packed: it cancels exactly against the train-mode
    BatchNorm mean subtraction.

    Row layout of the returned slab (lane width W = max(round128(H), round128(D_out))):
      [0            : D_in)            w1                      (rows D_in..D_in_pad zero)
      [D_in_pad     : D_in_pad+8)      row0 gamma, row1 beta, row2 b2 (lane-padded), rest 0
      [D_in_pad+8   : D_in_pad+8+H)    w2 (output lanes zero-padded to P)
    """
    del b1  # exactly cancelled by the BatchNorm (train-mode) mean subtraction

    w1 = jnp.asarray(w1, jnp.float32)
    w2 = jnp.asarray(w2, jnp.float32)
    D_in, H = w1.shape
    H2, D_out = w2.shape
    assert H2 == H, "w1/w2 hidden dims disagree"

    P = _round_up(D_out, LANES)          # lane-dense (padded) output width
    W = max(_round_up(H, LANES), P)      # common lane width of the slab
    D_in_pad = _round_up(D_in, SUBLANES)

    def _row(v, n):
        v = jnp.asarray(v, jnp.float32).reshape(1, -1)[:, :n]
        return jnp.pad(v, ((0, 0), (0, W - n)))

    w1_rows = jnp.pad(w1, ((0, D_in_pad - D_in), (0, W - H)))
    param_rows = jnp.concatenate(
        [_row(gamma, H), _row(beta, H), _row(b2, D_out),
         jnp.zeros((PARAM_ROWS - 3, W), jnp.float32)], axis=0)
    w2_rows = jnp.pad(w2, ((0, 0), (0, W - D_out)))

    slab = jnp.concatenate([w1_rows, param_rows, w2_rows], axis=0)
    meta = dict(D_in=D_in, D_in_pad=D_in_pad, H=H, D_out=D_out, P=P, W=W)
    return slab, meta


def _make_kernel(D_in, D_in_pad, H, P):
    p0 = D_in_pad                 # first param row (8-aligned)
    w2_r0 = D_in_pad + PARAM_ROWS  # first w2 row (8-aligned)

    def mlp_kernel(x_ref, slab_ref, o_ref):
        x = x_ref[...]                                                   # (B, D_in) f32
        inv_b = 1.0 / x.shape[0]

        # Linear 1 (MXU).  First-layer bias omitted: cancels with BN mean subtraction.
        w1 = slab_ref[0:D_in, :H]
        h = jnp.dot(x, w1, preferred_element_type=jnp.float32)          # (B, H)

        # BatchNorm1d (training mode): single-pass batch mean / biased variance,
        # folded into one scale/shift FMA over (B, H).
        mean = jnp.sum(h, axis=0, keepdims=True) * inv_b                 # (1, H)
        mean_sq = jnp.sum(h * h, axis=0, keepdims=True) * inv_b          # (1, H)
        var = mean_sq - mean * mean

        gamma = slab_ref[p0:p0 + 1, :H]                                  # (1, H)
        beta = slab_ref[p0 + 1:p0 + 2, :H]                               # (1, H)
        b2 = slab_ref[p0 + 2:p0 + 3, :P]                                 # (1, P)

        scale = gamma * jax.lax.rsqrt(var + BN_EPS)                      # rsqrt -> EUP
        shift = beta - mean * scale
        h_bn = h * scale + shift

        # LeakyReLU (slope 0.01): max(h, slope*h) — one mul + one max on the VPU.
        h_act = jnp.maximum(h_bn, LEAKY_SLOPE * h_bn)

        # Linear 2 (MXU), lane-dense padded output (unmasked vst).
        w2 = slab_ref[w2_r0:w2_r0 + H, :P]
        out = jnp.dot(h_act, w2, preferred_element_type=jnp.float32) + b2
        o_ref[...] = out.astype(o_ref.dtype)

    return mlp_kernel


@functools.partial(jax.jit, static_argnames=("D_in", "D_in_pad", "H", "P"))
def _forward(x, slab, *, D_in, D_in_pad, H, P):
    B = x.shape[0]
    kernel = _make_kernel(D_in, D_in_pad, H, P)
    full = lambda shape: pl.BlockSpec(shape, lambda: tuple(0 for _ in shape))
    return pl.pallas_call(
        kernel,
        out_shape=jax.ShapeDtypeStruct((B, P), jnp.float32),
        grid=(),
        in_specs=[full(x.shape), full(slab.shape)],
        out_specs=full((B, P)),
    )(x, slab)


def mlp_for_one(x, slab, meta):
    """Forward pass of MLPForOne(input_size, output_size, hidden_layers=[H]) in train mode.

    Returns the lane-dense (B, P) output; columns [:, :meta['D_out']] are the valid values
    (padded lanes are exact zeros).  Slicing is left to the consumer so the hot path is a
    single pallas_call with exactly two input DMAs (x + the packed parameter slab).
    """
    return _forward(jnp.asarray(x, jnp.float32), slab,
                    D_in=meta["D_in"], D_in_pad=meta["D_in_pad"],
                    H=meta["H"], P=meta["P"])


def reference(x, w1, b1, gamma, beta, w2, b2):
    """Pure-JAX reference of the full PyTorch forward (including b1)."""
    h = x @ w1 + b1
    mean = jnp.mean(h, axis=0, keepdims=True)
    var = jnp.mean((h - mean) ** 2, axis=0, keepdims=True)
    h = (h - mean) / jnp.sqrt(var + BN_EPS) * gamma + beta
    h = jnp.where(h > 0, h, LEAKY_SLOPE * h)
    return h @ w2 + b2


if __name__ == "__main__":
    # MLPForOne(input_size=32, output_size=16, hidden_layers=[128])
    B, D_in, H, D_out = 8, 32, 128, 16

    key = jax.random.PRNGKey(0)
    kx, kw1, kb1, kw2, kb2 = jax.random.split(key, 5)

    x = jax.random.normal(kx, (B, D_in), dtype=jnp.float32)

    # Deterministic parameter init (PyTorch-Linear-style uniform bounds).
    lim1 = 1.0 / jnp.sqrt(D_in)
    w1 = jax.random.uniform(kw1, (D_in, H), jnp.float32, -lim1, lim1)
    b1 = jax.random.uniform(kb1, (1, H), jnp.float32, -lim1, lim1)
    gamma = jnp.ones((1, H), jnp.float32)   # BatchNorm1d affine weight
    beta = jnp.zeros((1, H), jnp.float32)   # BatchNorm1d affine bias
    lim2 = 1.0 / jnp.sqrt(H)
    w2 = jax.random.uniform(kw2, (H, D_out), jnp.float32, -lim2, lim2)
    b2 = jax.random.uniform(kb2, (1, D_out), jnp.float32, -lim2, lim2)

    # Pack once (parameter-creation time), reuse for every forward call.
    slab, meta = pack_mlp_params(w1, b1, gamma, beta, w2, b2)
    slab = jax.block_until_ready(slab)

    out_padded = mlp_for_one(x, slab, meta)
    out_padded = jax.block_until_ready(out_padded)

    ref = reference(x, w1, b1, gamma, beta, w2, b2)
    out = out_padded[:, :D_out]             # test-only slice; not part of the hot path
    assert out_padded.shape == (B, meta["P"])
    assert out.shape == (B, D_out)
    assert jnp.allclose(out, ref, atol=1e-4, rtol=1e-4)
    # Padded lanes must be exact zeros (w2/b2 zero-padded).
    assert jnp.all(out_padded[:, D_out:] == 0.0)

    print("KERNEL_OK")
</pallas_src>

<mosaic_0001>
module attributes {stable_mosaic.version = 11 : i64} {
  func.func @mlp_kernel(%arg0: memref<8x32xf32, #tpu.memory_space<vmem>>, %arg1: memref<168x128xf32, #tpu.memory_space<vmem>>, %arg2: memref<8x128xf32, #tpu.memory_space<vmem>>) attributes {dimension_semantics = [], scalar_prefetch = 0 : i64, scratch_operands = 0 : i64, tpu.core_type = #tpu.core_type<tc>} {
    %c0 = arith.constant 0 : index
    %c0_0 = arith.constant 0 : index
    %0 = vector.load %arg0[%c0, %c0_0] : memref<8x32xf32, #tpu.memory_space<vmem>>, vector<8x32xf32>
    %c0_1 = arith.constant 0 : index
    %c0_2 = arith.constant 0 : index
    %1 = vector.load %arg1[%c0_1, %c0_2] : memref<168x128xf32, #tpu.memory_space<vmem>>, vector<32x128xf32>
    %cst = arith.constant dense<0.000000e+00> : vector<8x128xf32>
    %2 = tpu.matmul %0, %1, %cst {dimension_numbers = #tpu.dot_dimension_numbers<[1], [0], [0], [1], [0, 0, 1, 1], [], []>} : vector<8x32xf32>, vector<32x128xf32>, vector<8x128xf32> -> vector<8x128xf32>
    %cst_3 = arith.constant dense<0.000000e+00> : vector<128xf32>
    %3 = vector.multi_reduction <add>, %2, %cst_3 [0] : vector<8x128xf32> to vector<128xf32>
    %4 = vector.shape_cast %3 : vector<128xf32> to vector<1x128xf32>
    %cst_4 = arith.constant 1.250000e-01 : f32
    %5 = vector.broadcast %cst_4 : f32 to vector<1x128xf32>
    %6 = arith.mulf %4, %5 : vector<1x128xf32>
    %7 = arith.mulf %2, %2 : vector<8x128xf32>
    %cst_5 = arith.constant dense<0.000000e+00> : vector<128xf32>
    %8 = vector.multi_reduction <add>, %7, %cst_5 [0] : vector<8x128xf32> to vector<128xf32>
    %9 = vector.shape_cast %8 : vector<128xf32> to vector<1x128xf32>
    %cst_6 = arith.constant 1.250000e-01 : f32
    %10 = vector.broadcast %cst_6 : f32 to vector<1x128xf32>
    %11 = arith.mulf %9, %10 : vector<1x128xf32>
    %12 = arith.mulf %6, %6 : vector<1x128xf32>
    %13 = arith.subf %11, %12 : vector<1x128xf32>
    %c32 = arith.constant 32 : index
    %c0_7 = arith.constant 0 : index
    %14 = vector.load %arg1[%c32, %c0_7] : memref<168x128xf32, #tpu.memory_space<vmem>>, vector<1x128xf32>
    %c33 = arith.constant 33 : index
    %c0_8 = arith.constant 0 : index
    %15 = vector.load %arg1[%c33, %c0_8] : memref<168x128xf32, #tpu.memory_space<vmem>>, vector<1x128xf32>
    %c34 = arith.constant 34 : index
    %c0_9 = arith.constant 0 : index
    %16 = vector.load %arg1[%c34, %c0_9] : memref<168x128xf32, #tpu.memory_space<vmem>>, vector<1x128xf32>
    %cst_10 = arith.constant 9.99999974E-6 : f32
    %17 = vector.broadcast %cst_10 : f32 to vector<1x128xf32>
    %18 = arith.addf %13, %17 : vector<1x128xf32>
    %19 = math.rsqrt %18 : vector<1x128xf32>
    %20 = arith.mulf %14, %19 : vector<1x128xf32>
    %21 = arith.mulf %6, %20 : vector<1x128xf32>
    %22 = arith.subf %15, %21 : vector<1x128xf32>
    %23 = vector.broadcast %20 : vector<1x128xf32> to vector<8x128xf32>
    %24 = arith.mulf %2, %23 : vector<8x128xf32>
    %25 = vector.broadcast %22 : vector<1x128xf32> to vector<8x128xf32>
    %26 = arith.addf %24, %25 : vector<8x128xf32>
    %cst_11 = arith.constant 0.00999999977 : f32
    %27 = vector.broadcast %cst_11 : f32 to vector<8x128xf32>
    %28 = arith.mulf %27, %26 : vector<8x128xf32>
    %29 = arith.maximumf %26, %28 : vector<8x128xf32>
    %c40 = arith.constant 40 : index
    %c0_12 = arith.constant 0 : index
    %30 = vector.load %arg1[%c40, %c0_12] : memref<168x128xf32, #tpu.memory_space<vmem>>, vector<128x128xf32>
    %cst_13 = arith.constant dense<0.000000e+00> : vector<8x128xf32>
    %31 = tpu.matmul %29, %30, %cst_13 {dimension_numbers = #tpu.dot_dimension_numbers<[1], [0], [0], [1], [0, 0, 1, 1], [], []>} : vector<8x128xf32>, vector<128x128xf32>, vector<8x128xf32> -> vector<8x128xf32>
    %32 = vector.broadcast %16 : vector<1x128xf32> to vector<8x128xf32>
    %33 = arith.addf %31, %32 : vector<8x128xf32>
    %c0_14 = arith.constant 0 : index
    %c0_15 = arith.constant 0 : index
    %34 = vector.load %arg2[%c0_14, %c0_15] : memref<8x128xf32, #tpu.memory_space<vmem>>, vector<8x128xf32>
    tpu.vector_store %arg2[%c0_14, %c0_15], %33 {strides = array<i32>} : memref<8x128xf32, #tpu.memory_space<vmem>>, vector<8x128xf32>,
    return
  }
}

</mosaic_0001>

<bundles_post_ra>
// kernel: _forward.1
= control target key start
LH: loop header
LB: loop body
LE: loop exit
PB: predicated region body
PF: predicated region fallthrough
CT: control target
= control target key end

     0   :  { %7 = vsyncpa [#allocation3], 0  ;;  %s509_s0 = inlined_call_operand.hbm [shape: f32[8,32], index: 0, kind: input, shape index: {}]   ;;  %s510_s1 = inlined_call_operand.hbm [shape: f32[168,128], index: 1, kind: input, shape index: {}]   ;;  %s511_s2 = inlined_call_operand.hbm [shape: f32[8,128], index: 2, kind: output, shape index: {}]  }
   0x1   :  { %8 = vsyncpa [#allocation6], 0 }
   0x2   :  { %9 = vsyncpa [#allocation4], 0  ;;  %s443_s9 = smov [#allocation2]   ;;  %s444_s11 = smov [#allocation5]  }
   0x3   :  { %s16_s10 = sshll.u32 %s443_s9, 4  ;;  %s25_s12 = sshll.u32 %s444_s11, 4  ;;  %s17_s10 = int_to_ptr.vmem [resolvable:$true] %s16_s10  ;;  %s466_s12 = int_to_ptr.vmem [resolvable:$true] %s25_s12 }
   0x4   :  { %s371_s15 = scalar_lea.hbm %s509_s0, 128 }
   0x5   :  { %p372_p0 = scmp.ne.s32.totalorder %s509_s0, %s371_s15  ;;  %p375_p1 = scmp.lt.u32.totalorder %s371_s15, %s509_s0 }
   0x7   :  { %p377_p2 = pnand %p375_p1, %p372_p0 }
   0x9   :  { %380 = shalt.err (!%p377_p2)
}
   0xa   :  { %s381_s20 = scalar_lea.vmem %s17_s10, 128  ;;  %p386_p4 = scmp.lt.s32.totalorder %s17_s10, %s17_s10 }
   0xb   :  { %p382_p3 = scmp.ne.s32.totalorder %s17_s10, %s381_s20  ;;  %p387_p5 = scmp.lt.s32.totalorder %s381_s20, %s381_s20 }
   0xd   :  { %p388_p6 = por %p387_p5, %p386_p4 }
   0xf   :  { %p389_p7 = pnand %p388_p6, %p382_p3 }
  0x11   :  { %392 = shalt.err (!%p389_p7)
}
  0x12   :  { %19 = dma.hbm_to_vmem [thread:$0]  %s509_s0, 128, %s17_s10, [#allocation3]  }
  0x13   :  { %s393_s25 = scalar_lea.hbm %s510_s1, 2688 }
  0x14   :  { %p394_p8 = scmp.ne.s32.totalorder %s510_s1, %s393_s25  ;;  %p397_p9 = scmp.lt.u32.totalorder %s393_s25, %s510_s1 }
  0x16   :  { %p399_p10 = pnand %p397_p9, %p394_p8 }
  0x18   :  { %402 = shalt.err (!%p399_p10)
}
  0x19   :  { %s403_s30 = scalar_lea.vmem %s466_s12, 2688  ;;  %p408_p12 = scmp.lt.s32.totalorder %s466_s12, %s466_s12 }
  0x1a   :  { %p404_p11 = scmp.ne.s32.totalorder %s466_s12, %s403_s30  ;;  %p409_p13 = scmp.lt.s32.totalorder %s403_s30, %s403_s30 }
  0x1c   :  { %p410_p0 = por %p409_p13, %p408_p12 }
  0x1e   :  { %p411_p1 = pnand %p410_p0, %p404_p11 }
  0x20   :  { %414 = shalt.err (!%p411_p1)
}
  0x21   :  { %s445_s0 = smov 128   ;;  %s446_s3 = smov 8  }
  0x22   :  { %31 = dma.hbm_to_vmem [thread:$0]  %s510_s1, 2688, %s466_s12, [#allocation6], %s445_s0, %s445_s0, %s446_s3  }
  0x23   :  { %437 = dma.done.wait [#allocation3], 128  }
  0x24   :  { %438 = vsyncadd [#allocation3], 4294967168 }
  0x25   :  { %439 = dma.done.wait [#allocation6], 2688  }
  0x26   :  { %440 = vsyncadd [#allocation6], 4294964608  ;;  %v447_v0 = vmov 0.0|0.0   ;;  %vm448_vm0 = vmmov 0   ;;  %v449_v1 = vmov 0.0   ;;  %v39_v2 = vld [vmem:[#allocation5] sm:$0xff]  ;;  %v142_v53 = vlaneseq }
  0x27   :  { %331 = vmatprep.subr.bf16.mxu0 %v447_v0  ;;  %293 = vmatprep.mubr.msk.f32.mxu0 %vm448_vm0, %v449_v1  ;;  %v40_v3 = vld [vmem:[#allocation5 + $0x8] sm:$0xff]  ;;  %v41_v4 = vld [vmem:[#allocation5 + $0x10] sm:$0xff]  ;;  %v42_v6 = vld [vmem:[#allocation5 + $0x18] sm:$0xff]  ;;  %vm43_vm1 = vcmask 261120   ;;  %s450_s1 = smov [#allocation7]  }
  0x28   :  { %337 = vmatprep.subr.bf16.mxu1 %v447_v0  ;;  %328 = vmatprep.mubr.msk.f32.mxu1 %vm448_vm0, %v449_v1  ;;  %v332_v5 = vpack.c.bf16 %v40_v3, %v39_v2  ;;  %v335_v7 = vpack.c.bf16 %v42_v6, %v41_v4  ;;  %v38_v8 = vld [vmem:[#allocation2] sm:$0xff]  ;;  %v154_v9 = vld [vmem:[#allocation5 + $0x28] sm:$0xff]  ;;  %v155_v10 = vld [vmem:[#allocation5 + $0x30] sm:$0xff]  ;;  %v143_v54 = vshrl.u32 %v142_v53, 7  ;;  %s251_s6 = sshll.u32 %s450_s1, 4  ;;  %s252_s6 = int_to_ptr.vmem [resolvable:$true] %s251_s6 }
  0x29   :  { %v338_v11 = vpack.c.bf16 %v155_v10, %v154_v9  ;;  %v156_v12 = vld [vmem:[#allocation5 + $0x38] sm:$0xff]  ;;  %v157_v13 = vld [vmem:[#allocation5 + $0x40] sm:$0xff]  ;;  %v158_v15 = vld [vmem:[#allocation5 + $0x48] sm:$0xff]  ;;  %s415_s7 = scalar_lea.vmem %s252_s6, 128  ;;  %p420_p3 = scmp.lt.s32.totalorder %s252_s6, %s252_s6 }
  0x2a   :  { %333 = vmatpush3.bf16.msra.mxu0 %v332_v5  ;;  %v341_v14 = vpack.c.bf16 %v157_v13, %v156_v12  ;;  %v159_v16 = vld [vmem:[#allocation5 + $0x50] sm:$0xff]  ;;  %v160_v18 = vld [vmem:[#allocation5 + $0x58] sm:$0xff]  ;;  %v161_v19 = vld [vmem:[#allocation5 + $0x60] sm:$0xff]  ;;  %v144_v56 = vsub.s32 0, %v143_v54  ;;  %p416_p2 = scmp.ne.s32.totalorder %s252_s6, %s415_s7  ;;  %p421_p4 = scmp.lt.s32.totalorder %s415_s7, %s415_s7 }
  0x2b   :  { %334 = vmatprep.subr.bf16.mxu0 %v447_v0  ;;  %339 = vmatpush3.bf16.msra.mxu1 %v338_v11  ;;  %v344_v17 = vpack.c.bf16 %v159_v16, %v158_v15  ;;  %v347_v20 = vpack.c.bf16 %v161_v19, %v160_v18  ;;  %v162_v21 = vld [vmem:[#allocation5 + $0x68] sm:$0xff]  ;;  %v163_v22 = vld [vmem:[#allocation5 + $0x70] sm:$0xff]  ;;  %v164_v24 = vld [vmem:[#allocation5 + $0x78] sm:$0xff] }
  0x2c   :  { %340 = vmatprep.subr.bf16.mxu1 %v447_v0  ;;  %v350_v23 = vpack.c.bf16 %v163_v22, %v162_v21  ;;  %v165_v25 = vld [vmem:[#allocation5 + $0x80] sm:$0xff]  ;;  %v166_v27 = vld [vmem:[#allocation5 + $0x88] sm:$0xff]  ;;  %v167_v28 = vld [vmem:[#allocation5 + $0x90] sm:$0xff]  ;;  %p422_p5 = por %p421_p4, %p420_p3 }
  0x2d   :  { %v353_v26 = vpack.c.bf16 %v165_v25, %v164_v24  ;;  %v168_v29 = vld [vmem:[#allocation5 + $0x98] sm:$0xff]  ;;  %v356_v30 = vpack.c.bf16 %v167_v28, %v166_v27  ;;  %v169_v31 = vld [vmem:[#allocation5 + $0xa0] sm:$0xff] }
  0x2e   :  { %336 = vmatpush3.bf16.msra.mxu0 %v335_v7  ;;  %v359_v32 = vpack.c.bf16 %v169_v31, %v168_v29  ;;  %v134_v55 = vld [vmem:[#allocation5 + $0x20] sm:$0x1]  ;;  %v135_v59 = vld [vmem:[#allocation5 + $0x21] sm:$0x1]  ;;  %v262_v4 = vld [vmem:[#allocation5 + $0x22] ss:$0 sm:$0xff]  ;;  %p423_p6 = pnand %p422_p5, %p416_p2 }
  0x2f   :  { %342 = vmatpush3.bf16.msra.mxu1 %v341_v14 }
  0x30   :  { %343 = vmatprep.subr.bf16.mxu1 %v447_v0 }
  0x31   :  { %294 = vmatmul.mubr.msk.f32.vlgmr.msra.gmra.mrb[0].mxu0 %vm43_vm1, %v38_v8 }
  0x33   :  { %345 = vmatpush3.bf16.msra.mxu1 %v344_v17 }
  0x34   :  { %346 = vmatprep.subr.bf16.mxu1 %v447_v0 }
  0x37   :  { %348 = vmatpush3.bf16.msra.mxu1 %v347_v20 }
  0x38   :  { %349 = vmatprep.subr.bf16.mxu1 %v447_v0 }
  0x3b   :  { %351 = vmatpush3.bf16.msra.mxu1 %v350_v23 }
  0x3c   :  { %352 = vmatprep.subr.bf16.mxu1 %v447_v0 }
  0x3f   :  { %354 = vmatpush3.bf16.msra.mxu1 %v353_v26 }
  0x40   :  { %355 = vmatprep.subr.bf16.mxu1 %v447_v0 }
  0x43   :  { %357 = vmatpush3.bf16.msra.mxu1 %v356_v30 }
  0x44   :  { %358 = vmatprep.subr.bf16.mxu1 %v447_v0 }
  0x47   :  { %360 = vmatpush3.bf16.msra.mxu1 %v359_v32 }
 0x104   :  { %v113_v33 = vpop.f32.mrb[0].mxu0 }
 0x105   :  { %v117_v34 = vrot.slane %v113_v33, 4  ;;  %v124_v35 = vmul.f32 %v113_v33, %v113_v33  ;;  %v295_v36 = vpop.f32.mrb[1].mxu0 }
 0x107   :  { %v118_v37 = vadd.f32 %v117_v34, %v113_v33  ;;  %v125_v38 = vrot.slane %v124_v35, 4 }
 0x109   :  { %v119_v39 = vrot.slane %v118_v37, 2  ;;  %v126_v40 = vadd.f32 %v125_v38, %v124_v35 }
 0x10b   :  { %v120_v41 = vadd.f32 %v119_v39, %v118_v37  ;;  %v127_v42 = vrot.slane %v126_v40, 2 }
 0x10d   :  { %v121_v43 = vrot.slane %v120_v41, 1  ;;  %v128_v44 = vadd.f32 %v127_v42, %v126_v40 }
 0x10f   :  { %v122_v45 = vadd.f32 %v121_v43, %v120_v41  ;;  %v129_v46 = vrot.slane %v128_v44, 1 }
 0x111   :  { %v123_v47 = vmul.f32 0.125, %v122_v45  ;;  %v130_v48 = vadd.f32 %v129_v46, %v128_v44 }
 0x113   :  { %v131_v49 = vmul.f32 0.125, %v130_v48  ;;  %v132_v50 = vmul.f32 %v123_v47, %v123_v47 }
 0x115   :  { %v133_v51 = vsub.f32 %v131_v49, %v132_v50 }
 0x117   :  { %v137_v52 = vadd.f32 1e-05, %v133_v51 }
 0x119   :  { %369 = vrsqrt.f32 %v137_v52 }
 0x123   :  { %v370_v57 = vpop.eup %369 }
 0x124   :  { %v139_v58 = vmul.f32 %v370_v57, %v134_v55 }
 0x126   :  { %v140_v60 = vmul.f32 %v139_v58, %v123_v47  ;;  %v145_v61 = vrot.slane %v139_v58, %v144_v56 }
 0x128   :  { %v141_v62 = vsub.f32 %v135_v59, %v140_v60  ;;  %v146_v63 = vmul.f32 %v145_v61, %v113_v33 }
 0x12a   :  { %v150_v0 = vrot.slane %v141_v62, %v144_v56 }
 0x12c   :  { %v151_v1 = vadd.f32 %v150_v0, %v146_v63 }
 0x12e   :  { %v152_v2 = vmul.f32 0.01, %v151_v1 }
 0x130   :  { %v153_v3 = vmax.f32 %v151_v1, %v152_v2 }
 0x132   :  { %329 = vmatmul.mubr.f32.vlgmr.msra.gmra.mrb[0].mxu1 %v153_v3 }
 0x205   :  { %v240_v5 = vpop.f32.mrb[0].mxu1 }
 0x206   :  { %v241_v6 = vadd.f32 %v262_v4, %v240_v5  ;;  %v330_v7 = vpop.f32.mrb[1].mxu1 }
 0x208   :  { %244 = vst [vmem:[#allocation7] sm:$0xff] %v241_v6 }
 0x209   :  { %426 = shalt.err (!%p423_p6)
}
 0x20a   :  { %s427_s10 = scalar_lea.hbm %s511_s2, 128 }
 0x20b   :  { %p428_p7 = scmp.ne.s32.totalorder %s511_s2, %s427_s10  ;;  %p431_p8 = scmp.lt.u32.totalorder %s427_s10, %s511_s2 }
 0x20d   :  { %p433_p9 = pnand %p431_p8, %p428_p7 }
 0x20f   :  { %436 = shalt.err (!%p433_p9)
}
 0x210   :  { %254 = dma.vmem_to_hbm [thread:$0]  %s252_s6, 128, %s511_s2, [#allocation4]  }
 0x211   :  { %441 = dma.done.wait [#allocation4], 128  }
 0x212   :  { %442 = vsyncadd [#allocation4], 4294967168 }
 0x213   :  { %258 = vsyncpa [#allocation3], 1 }
 0x214   :  { %259 = vsyncpa [#allocation6], 1 }
 0x215   :  { %260 = vsyncpa [#allocation4], 1 }

</bundles_post_ra>
